<compile_context>
chip_gen: v7x
topology: tpu7x:2x2x1
jax: 0.10.0
libtpu: 0.0.40
codegen_flags: <defaults>
</compile_context>

<pallas_src>
import functools
import math

import jax
import jax.numpy as jnp
from jax import lax
from jax.experimental import pallas as pl
from jax.experimental.pallas import tpu as pltpu

QUANT_BITS = 8
QUANT_LIMIT = float(2 ** (QUANT_BITS - 1) - 1)  # 127.0 (signed)


def _round_up(a: int, b: int) -> int:
    return ((a + b - 1) // b) * b


def _largest_divisor_tile(dim: int, max_tile: int, unit: int = 128) -> int:
    """Largest multiple of `unit` that divides `dim` and is <= max(max_tile, unit).

    `dim` must itself be a multiple of `unit`.  Used so the K grid tiles the
    (128-padded) reduction dim exactly, with no extra zero padding.
    """
    n = dim // unit
    best = 1
    for f in range(1, n + 1):
        if n % f == 0 and f * unit <= max(max_tile, unit):
            best = f
    return best * unit


def _device_kind() -> str:
    try:
        return jax.devices()[0].device_kind.lower()
    except Exception:  # pragma: no cover
        return ""


def _use_int8_mxu(kind=None) -> bool:
    """int8-operand / int32-accumulate MXU path is available on v5 / v6.

    v7x dropped integer MXU support (fp8 only, which cannot represent the
    quantized integers exactly), so those chips use the bf16 path.
    """
    kind = _device_kind() if kind is None else kind
    return ("v5" in kind) or ("v6" in kind)


def _default_tiles(use_int8: bool, kind: str):
    if use_int8 and "v5" in kind:
        # v5e is already compute-bound at 512-class int8 tiles.
        return 512, 512, 512
    # v6e / v7x: ~1k output tiles push arithmetic intensity past the HBM roofline.
    return 1024, 1024, 1024


# ----------------------------------------------------------------------------
# Prepass: quantize a 2-D tensor once (f32 -> int8 or int8-valued bf16),
# zero-filling the K overhang (so no jnp.pad of the input is needed).
# ----------------------------------------------------------------------------
def _quantize_kernel(scale_ref, x_ref, q_ref, *, k_valid, col_tile):
    s = scale_ref[0]
    q = jnp.clip(jnp.round(x_ref[...] * s), -QUANT_LIMIT, QUANT_LIMIT)
    # Zero the padded reduction columns (>= k_valid) so they contribute
    # nothing to the matmul.  Row overhang is discarded by the masked store.
    col = pl.program_id(1) * col_tile + lax.broadcasted_iota(jnp.int32, q.shape, 1)
    q = jnp.where(col < k_valid, q, 0.0)
    q_ref[...] = q.astype(q_ref.dtype)


def _quantize(x2d, scale, k_out, out_dtype, *, row_tile=512, col_tile=1024):
    """x2d: (rows, k_in) f32 -> (rows, k_out) out_dtype with cols >= k_in zeroed."""
    rows, k_in = x2d.shape
    rt = min(row_tile, _round_up(rows, 32))
    ct = _largest_divisor_tile(k_out, col_tile, 128)
    kern = functools.partial(_quantize_kernel, k_valid=k_in, col_tile=ct)
    return pl.pallas_call(
        kern,
        out_shape=jax.ShapeDtypeStruct((rows, k_out), out_dtype),
        grid_spec=pltpu.PrefetchScalarGridSpec(
            num_scalar_prefetch=0,
            grid=(pl.cdiv(rows, rt), k_out // ct),
            in_specs=[
                pl.BlockSpec(memory_space=pltpu.MemorySpace.SMEM),      # scale
                pl.BlockSpec((rt, ct), lambda i, j: (i, j)),            # x tile
            ],
            out_specs=pl.BlockSpec((rt, ct), lambda i, j: (i, j)),
        ),
        compiler_params=pltpu.CompilerParams(
            dimension_semantics=("parallel", "parallel")),
    )(scale, x2d)


def quantize_weight(weight, amax_w=None):
    """One-shot weight quantization (call once at parameter-load time).

    Returns (qw, amax_w) where qw is (out_features, round_up(in_features,128))
    with zeroed K padding, in int8 (v5/v6) or int8-valued bf16 (v7x / other).
    """
    weight = weight.astype(jnp.float32)
    _, k_in = weight.shape
    if amax_w is None:
        amax_w = jnp.max(jnp.abs(weight))
    amax_w = jnp.maximum(jnp.asarray(amax_w, jnp.float32), 1e-12)
    scale_w = (QUANT_LIMIT / amax_w).reshape(1).astype(jnp.float32)
    k_p = _round_up(k_in, 128)
    qdtype = jnp.int8 if _use_int8_mxu() else jnp.bfloat16
    qw = _quantize(weight, scale_w, k_p, qdtype)
    return qw, amax_w


# ----------------------------------------------------------------------------
# Hot path: (M, N, K)-tiled MXU matmul, fused dequant + bias at K-finalize.
# ----------------------------------------------------------------------------
def _matmul_bf16_kernel(inv_scale_ref, qx_ref, qw_ref, b_ref, o_ref):
    """bf16 operands; accumulate directly into the resident f32 output block.

    TODO(synk): f32 accumulation of int-valued bf16 products is exact only for
    in_features up to ~1000 (127*127*K < 2^24); v5/v6 use the int32 path below.
    """
    k = pl.program_id(2)

    @pl.when(k == 0)
    def _():
        o_ref[...] = jnp.zeros_like(o_ref)

    o_ref[...] += lax.dot_general(
        qx_ref[...], qw_ref[...],
        dimension_numbers=(((1,), (1,)), ((), ())),   # contract K of (M,K)x(N,K)
        preferred_element_type=jnp.float32)

    @pl.when(k == pl.num_programs(2) - 1)
    def _():
        o_ref[...] = o_ref[...] * inv_scale_ref[0] + b_ref[...]


def _matmul_int8_kernel(inv_scale_ref, qx_ref, qw_ref, b_ref, o_ref, acc_ref):
    """int8 operands, int32 MXU accumulation (v5e / v6e); exact for any K."""
    k = pl.program_id(2)

    @pl.when(k == 0)
    def _():
        acc_ref[...] = jnp.zeros_like(acc_ref)

    acc_ref[...] += lax.dot_general(
        qx_ref[...], qw_ref[...],
        dimension_numbers=(((1,), (1,)), ((), ())),
        preferred_element_type=jnp.int32)

    @pl.when(k == pl.num_programs(2) - 1)
    def _():
        o_ref[...] = acc_ref[...].astype(jnp.float32) * inv_scale_ref[0] + b_ref[...]


def adapt_linear_forward(x, weight=None, bias=None, *, qw=None,
                         amax=None, amax_w=None, tm=None, tn=None, tk=None):
    """Pallas implementation of AdaPT_Linear.forward (int8 quantized path).

    x: (..., in_features); weight: (out_features, in_features) OR a
    pre-quantized `qw` (from quantize_weight, hoisted out of the hot path)
    together with its `amax_w`; bias: (out_features,) or None.
    Returns (..., out_features) in f32.
    """
    kind = _device_kind()
    use_int8 = _use_int8_mxu(kind)
    qdtype = jnp.int8 if use_int8 else jnp.bfloat16

    orig_shape = x.shape
    k_in = x.shape[-1]
    x2d = x.reshape(-1, k_in).astype(jnp.float32)
    m = x2d.shape[0]
    k_p = _round_up(k_in, 128)

    # Weight: use the hoisted, pre-quantized copy when given (per-call
    # quantization of a constant calibrated weight is wasted HBM traffic).
    if qw is None:
        assert weight is not None, "need `weight` or pre-quantized `qw`"
        qw, amax_w = quantize_weight(weight, amax_w=amax_w)
    else:
        assert amax_w is not None, "pre-quantized `qw` requires `amax_w`"
    n_out = qw.shape[0]
    assert qw.shape[1] == k_p and qw.dtype == qdtype

    # Calibration (quantizer amax). Real AdaPT uses the calibrated
    # TensorQuantizer.amax; default simulates it as per-tensor max-abs.
    if amax is None:
        amax = jnp.max(jnp.abs(x2d))
    amax = jnp.maximum(jnp.asarray(amax, jnp.float32), 1e-12)
    amax_w = jnp.maximum(jnp.asarray(amax_w, jnp.float32), 1e-12)
    scale_in = (QUANT_LIMIT / amax).reshape(1).astype(jnp.float32)
    inv_scale = ((amax * amax_w) / (QUANT_LIMIT * QUANT_LIMIT)
                 ).reshape(1).astype(jnp.float32)

    if bias is None:
        bias = jnp.zeros((n_out,), jnp.float32)
    b2d = bias.astype(jnp.float32).reshape(1, n_out)

    # ---- tile selection (generation-aware, VMEM-budgeted) -------------------
    tm_d, tn_d, tk_d = _default_tiles(use_int8, kind)
    tm = tm_d if tm is None else tm
    tn = tn_d if tn is None else tn
    tk = tk_d if tk is None else tk
    m_unit = 32 if use_int8 else 16          # int8 sublane tile is (32,128)
    tm_e = min(_round_up(tm, m_unit), _round_up(m, m_unit))
    tn_e = min(_round_up(tn, 128), _round_up(n_out, 128))
    tk_e = _largest_divisor_tile(k_p, tk, 128)   # divides k_p exactly

    # v7x megacore: keep >=2 blocks in a "parallel" axis when possible
    # (no-op on single-TC v5e/v6e and on problems that already have >1 block).
    if pl.cdiv(m, tm_e) * pl.cdiv(n_out, tn_e) == 1:
        if tn_e >= 256:
            tn_e //= 2
        elif tm_e >= 2 * m_unit:
            tm_e = _round_up(tm_e // 2, m_unit)

    # ---- quantize x once (zero-filled K padding folded into the prepass) ----
    qx = _quantize(x2d, scale_in, k_p, qdtype)          # (m, k_p)

    # ---- VMEM budget / compiler params --------------------------------------
    op_bytes = jnp.dtype(qdtype).itemsize
    vmem_need = (2 * (tm_e + tn_e) * tk_e * op_bytes    # double-buffered operands
                 + 2 * tm_e * tn_e * 4                  # double-buffered f32 out
                 + (tm_e * tn_e * 4 if use_int8 else 0)  # int32 acc scratch
                 + 2 * tn_e * 4)                        # bias
    vmem_cap = (56 << 20) if "v7" in kind else (100 << 20)   # v7x: 64 MiB physical
    vmem_limit = int(min(vmem_cap, max(2 * vmem_need, 32 << 20)))

    if use_int8:
        kernel = _matmul_int8_kernel
        scratch = [pltpu.VMEM((tm_e, tn_e), jnp.int32)]
    else:
        kernel = _matmul_bf16_kernel
        scratch = []                                     # accumulate into o_ref

    grid = (pl.cdiv(m, tm_e), pl.cdiv(n_out, tn_e), k_p // tk_e)
    out = pl.pallas_call(
        kernel,
        out_shape=jax.ShapeDtypeStruct((m, n_out), jnp.float32),   # no output slice
        grid_spec=pltpu.PrefetchScalarGridSpec(
            num_scalar_prefetch=0,
            grid=grid,
            in_specs=[
                pl.BlockSpec(memory_space=pltpu.MemorySpace.SMEM),       # inv_scale
                pl.BlockSpec((tm_e, tk_e), lambda i, j, k: (i, k)),      # qx tile
                pl.BlockSpec((tn_e, tk_e), lambda i, j, k: (j, k)),      # qw tile (N,K)
                pl.BlockSpec((1, tn_e), lambda i, j, k: (0, j)),         # bias tile
            ],
            out_specs=pl.BlockSpec((tm_e, tn_e), lambda i, j, k: (i, j)),
            scratch_shapes=scratch,
        ),
        compiler_params=pltpu.CompilerParams(
            dimension_semantics=("parallel", "parallel", "arbitrary"),
            vmem_limit_bytes=vmem_limit),
    )(inv_scale, qx, qw, b2d)

    return out.reshape(orig_shape[:-1] + (n_out,))


# ----------------------------------------------------------------------------
# Pure-JAX reference mirroring the PyTorch int8 path.
# ----------------------------------------------------------------------------
def _reference_forward(x, weight, bias):
    amax = jnp.max(jnp.abs(x))
    amax_w = jnp.max(jnp.abs(weight))
    s_in = QUANT_LIMIT / amax
    s_w = QUANT_LIMIT / amax_w
    qx = jnp.clip(jnp.round(x * s_in), -QUANT_LIMIT, QUANT_LIMIT).astype(jnp.int32)
    qw = jnp.clip(jnp.round(weight * s_w), -QUANT_LIMIT, QUANT_LIMIT).astype(jnp.int32)
    acc = jnp.einsum("...k,nk->...n", qx, qw).astype(jnp.float32)
    return acc / (s_in * s_w) + bias


if __name__ == "__main__":
    # Small shapes consistent with a Linear layer applied to a (B, S, F) input.
    batch, seq, in_features, out_features = 2, 8, 32, 16

    key = jax.random.PRNGKey(0)
    k_x, k_w, k_b = jax.random.split(key, 3)

    # Deterministic parameter init mimicking reset_parameters():
    #   kaiming_uniform_(weight, a=sqrt(5)) -> U(-1/sqrt(fan_in), 1/sqrt(fan_in))
    fan_in = in_features
    bound = 1.0 / math.sqrt(fan_in)
    weight = jax.random.uniform(
        k_w, (out_features, in_features), jnp.float32, minval=-bound, maxval=bound)
    bias = jax.random.uniform(
        k_b, (out_features,), jnp.float32, minval=-bound, maxval=bound)
    x = jax.random.normal(k_x, (batch, seq, in_features), jnp.float32)

    # TODO(synk): the approximate-multiplier LUT (axx_mult, e.g. mul8s_acc CUDA
    # kernel) has no clean Pallas equivalent; exact int8 products are used.

    # Hoisted path: weight quantized once at parameter-load time.
    qw, amax_w = quantize_weight(weight)
    y = adapt_linear_forward(x, bias=bias, qw=qw, amax_w=amax_w)
    y = jax.block_until_ready(y)

    # Convenience path (per-call weight quantization) — same numerics.
    y2 = jax.block_until_ready(adapt_linear_forward(x, weight, bias))

    y_ref = _reference_forward(x, weight, bias)
    assert y.shape == (batch, seq, out_features)
    assert jnp.allclose(y, y_ref, rtol=1e-5, atol=1e-5), "mismatch vs reference"
    assert jnp.allclose(y2, y_ref, rtol=1e-5, atol=1e-5), "mismatch vs reference (per-call)"

    print("KERNEL_OK")
</pallas_src>

<mosaic_0001>
module attributes {stable_mosaic.version = 11 : i64} {
  func.func @_quantize_kernel(%arg0: i32, %arg1: i32, %arg2: memref<1xf32, #tpu.memory_space<smem>>, %arg3: memref<32x128xf32, #tpu.memory_space<vmem>>, %arg4: memref<32x128xbf16, #tpu.memory_space<vmem>>) attributes {dimension_semantics = [#tpu.dimension_semantics<parallel>, #tpu.dimension_semantics<parallel>], iteration_bounds = array<i64: 1, 1>, scalar_prefetch = 0 : i64, scratch_operands = 0 : i64, tpu.core_type = #tpu.core_type<tc>, window_params = [{transform_indices = @transform_0, window_bounds = array<i64: 1>}, {transform_indices = @transform_1, window_bounds = array<i64: 32, 128>}, {transform_indices = @transform_2, window_bounds = array<i64: 32, 128>}]} {
    %c0 = arith.constant 0 : index
    %0 = memref.load %arg2[%c0] : memref<1xf32, #tpu.memory_space<smem>>
    %c0_0 = arith.constant 0 : index
    %c0_1 = arith.constant 0 : index
    %1 = vector.load %arg3[%c0_0, %c0_1] : memref<32x128xf32, #tpu.memory_space<vmem>>, vector<32x128xf32>
    %2 = vector.broadcast %0 : f32 to vector<32x128xf32>
    %3 = arith.mulf %1, %2 : vector<32x128xf32>
    %4 = math.roundeven %3 : vector<32x128xf32>
    %cst = arith.constant -1.270000e+02 : f32
    %cst_2 = arith.constant 1.270000e+02 : f32
    %5 = vector.broadcast %cst : f32 to vector<32x128xf32>
    %6 = arith.maximumf %5, %4 : vector<32x128xf32>
    %7 = vector.broadcast %cst_2 : f32 to vector<32x128xf32>
    %8 = arith.minimumf %7, %6 : vector<32x128xf32>
    %c128_i32 = arith.constant 128 : i32
    %9 = arith.muli %arg1, %c128_i32 : i32
    %10 = tpu.iota {dimensions = array<i32: 1>} : vector<32x128xi32>
    %11 = vector.broadcast %9 : i32 to vector<32x128xi32>
    %12 = arith.addi %11, %10 : vector<32x128xi32>
    %c32_i32 = arith.constant 32 : i32
    %13 = vector.broadcast %c32_i32 : i32 to vector<32x128xi32>
    %14 = arith.cmpi slt, %12, %13 : vector<32x128xi32>
    %cst_3 = arith.constant 0.000000e+00 : f32
    %15 = vector.broadcast %cst_3 : f32 to vector<32x128xf32>
    %16 = arith.select %14, %8, %15 : vector<32x128xi1>, vector<32x128xf32>
    %17 = arith.truncf %16 : vector<32x128xf32> to vector<32x128xbf16>
    %c0_4 = arith.constant 0 : index
    %c0_5 = arith.constant 0 : index
    %18 = vector.load %arg4[%c0_4, %c0_5] : memref<32x128xbf16, #tpu.memory_space<vmem>>, vector<32x128xbf16>
    tpu.vector_store %arg4[%c0_4, %c0_5], %17 {strides = array<i32>} : memref<32x128xbf16, #tpu.memory_space<vmem>>, vector<32x128xbf16>,
    return
  }
  func.func @transform_0(%arg0: i32, %arg1: i32) -> i32 {
    %c0_i32 = arith.constant 0 : i32
    %c0_i32_0 = arith.constant 0 : i32
    return %c0_i32 : i32
  }
  func.func @transform_1(%arg0: i32, %arg1: i32) -> (i32, i32) {
    %c0_i32 = arith.constant 0 : i32
    return %arg0, %arg1 : i32, i32
  }
  func.func @transform_2(%arg0: i32, %arg1: i32) -> (i32, i32) {
    %c0_i32 = arith.constant 0 : i32
    return %arg0, %arg1 : i32, i32
  }
}

</mosaic_0001>

<bundles_post_ra>
// kernel: tpu_custom_call.1
= control target key start
LH: loop header
LB: loop body
LE: loop exit
PB: predicated region body
PF: predicated region fallthrough
CT: control target
= control target key end

     0   :  { %8 = vsyncpa [#allocation4], 0  ;;  %s225_s0 = inlined_call_operand.<no memory space> [shape: f32[1], index: 0, kind: input, shape index: {}]   ;;  %s226_s1 = inlined_call_operand.hbm [shape: f32[16,32], index: 1, kind: input, shape index: {}]   ;;  %s227_s2 = inlined_call_operand.hbm [shape: bf16[16,128], index: 2, kind: output, shape index: {}]  }
   0x1   :  { %9 = vsyncpa [#allocation5], 0 }
   0x2   :  { %16 = vsyncadd [#allocation4], 256  ;;  %s177_s9 = smov [#allocation3]   ;;  %s129_s13 = scalar_lea.hbm %s226_s1, 256 }
   0x3   :  { %s17_s10 = sshll.u32 %s177_s9, 4  ;;  %p130_p0 = scmp.ne.s32.totalorder %s226_s1, %s129_s13  ;;  %s18_s10 = int_to_ptr.vmem [resolvable:$true] %s17_s10 }
   0x4   :  { %p133_p1 = scmp.lt.u32.totalorder %s129_s13, %s226_s1 }
   0x6   :  { %p135_p2 = pnand %p133_p1, %p130_p0 }
   0x8   :  { %138 = shalt.err (!%p135_p2)
}
   0x9   :  { %s139_s18 = scalar_lea.vmem %s18_s10, 256  ;;  %s143_s19 = scalar_lea.vmem %s18_s10, 512 }
   0xa   :  { %p140_p3 = scmp.ne.s32.totalorder %s18_s10, %s139_s18  ;;  %p144_p4 = scmp.lt.s32.totalorder %s18_s10, %s18_s10 }
   0xb   :  { %p145_p5 = scmp.lt.s32.totalorder %s143_s19, %s139_s18 }
   0xd   :  { %p146_p6 = por %p145_p5, %p144_p4 }
   0xf   :  { %p147_p7 = pnand %p146_p6, %p140_p3 }
  0x11   :  { %150 = shalt.err (!%p147_p7)
}
  0x12   :  { %s178_s20 = smov 128   ;;  %s179_s21 = smov 8  }
  0x13   :  { %23 = dma.hbm_to_vmem [thread:$0]  %s226_s1, 256, %s18_s10, [#allocation4], %s178_s20, %s178_s20, %s179_s21  }
  0x14   :  { %173 = dma.done.wait [#allocation4], 512  }
  0x15   :  { %174 = vsyncadd [#allocation4], 4294966784  ;;  %v50_v0 = vlaneseq  ;;  %v32_v1 = vstv %s225_s0  ;;  %v28_v2 = vld [vmem:[#allocation3] sm:$0xff]  ;;  %v29_v3 = vld [vmem:[#allocation3 + $0x8] sm:$0xff] }
  0x16   :  { %v30_v5 = vld [vmem:[#allocation3 + $0x10] sm:$0xff]  ;;  %v33_v6 = vmul.f32 %v32_v1, %v28_v2  ;;  %v34_v7 = vmul.f32 %v32_v1, %v29_v3  ;;  %v31_v8 = vld [vmem:[#allocation3 + $0x18] sm:$0xff] }
  0x17   :  { %v51_v4 = vand.u32 127, %v50_v0  ;;  %v35_v9 = vmul.f32 %v32_v1, %v30_v5  ;;  %v36_v10 = vmul.f32 %v32_v1, %v31_v8 }
  0x18   :  { %v119_v11 = vround.rtne.f32 %v33_v6  ;;  %v120_v12 = vround.rtne.f32 %v34_v7 }
  0x19   :  { %v121_v13 = vround.rtne.f32 %v35_v9  ;;  %vm54_vm0 = vcmp.lt.s32.totalorder %v51_v4, 32  ;;  %v122_v14 = vround.rtne.f32 %v36_v10 }
  0x1a   :  { %v96_v15 = vclamps-f32 %v119_v11, 127.0  ;;  %v97_v16 = vclamps-f32 %v120_v12, 127.0 }
  0x1b   :  { %v98_v17 = vclamps-f32 %v121_v13, 127.0  ;;  %v99_v18 = vclamps-f32 %v122_v14, 127.0 }
  0x1c   :  { %v55_v19 = vsel %vm54_vm0, %v96_v15, 0.0  ;;  %v56_v20 = vsel %vm54_vm0, %v97_v16, 0.0 }
  0x1d   :  { %v57_v21 = vsel %vm54_vm0, %v98_v17, 0.0  ;;  %v111_v22 = vpack.c.bf16 %v56_v20, %v55_v19  ;;  %v58_v23 = vsel %vm54_vm0, %v99_v18, 0.0 }
  0x1e   :  { %v116_v24 = vpack.c.bf16 %v58_v23, %v57_v21 }
  0x1f   :  { %112 = vst [vmem:[#allocation6] sm:$0xff] %v111_v22  }
  0x20   :  { %118 = vst [vmem:[#allocation6 + $0x8] sm:$0xff] %v116_v24  }
  0x21   :  { %83 = vsyncadd [#allocation5], 128  ;;  %s180_s0 = smov [#allocation6]  }
  0x22   :  { %s84_s1 = sshll.u32 %s180_s0, 4  ;;  %s85_s1 = int_to_ptr.vmem [resolvable:$true] %s84_s1 }
  0x23   :  { %s151_s26 = scalar_lea.vmem %s85_s1, 128  ;;  %s155_s27 = scalar_lea.vmem %s85_s1, 256 }
  0x24   :  { %p152_p8 = scmp.ne.s32.totalorder %s85_s1, %s151_s26  ;;  %p156_p9 = scmp.lt.s32.totalorder %s85_s1, %s85_s1 }
  0x25   :  { %p157_p10 = scmp.lt.s32.totalorder %s155_s27, %s151_s26 }
  0x27   :  { %p158_p11 = por %p157_p10, %p156_p9 }
  0x29   :  { %p159_p12 = pnand %p158_p11, %p152_p8 }
  0x2b   :  { %162 = shalt.err (!%p159_p12)
}
  0x2c   :  { %s163_s30 = scalar_lea.hbm %s227_s2, 128 }
  0x2d   :  { %p164_p13 = scmp.ne.s32.totalorder %s227_s2, %s163_s30  ;;  %p167_p0 = scmp.lt.u32.totalorder %s163_s30, %s227_s2 }
  0x2f   :  { %p169_p1 = pnand %p167_p0, %p164_p13 }
  0x31   :  { %172 = shalt.err (!%p169_p1)
}
  0x32   :  { %s181_s7 = smov 64   ;;  %s182_s8 = smov 4  }
  0x33   :  { %90 = dma.vmem_to_hbm [thread:$0]  %s85_s1, 128, %s227_s2, [#allocation5], %s181_s7, %s181_s7, %s182_s8  }
  0x34   :  { %175 = dma.done.wait [#allocation5], 256  }
  0x35   :  { %176 = vsyncadd [#allocation5], 4294967040 }
  0x36   :  { %94 = vsyncpa [#allocation4], 1 }
  0x37   :  { %95 = vsyncpa [#allocation5], 1 }

</bundles_post_ra>
